<compile_context>
chip_gen: v7x
topology: tpu7x:2x2x1
jax: 0.10.0
libtpu: 0.0.40
codegen_flags: <defaults>
</compile_context>

<pallas_src>
import jax
import jax.numpy as jnp
from jax.experimental import pallas as pl
from jax.experimental.pallas import tpu as pltpu


def _erf(x):
    # Abramowitz & Stegun 7.1.26 rational approximation (|err| <= 1.5e-7).
    a1, a2, a3, a4, a5 = 0.254829592, -0.284496736, 1.421413741, -1.453152027, 1.061405429
    p = 0.3275911
    ax = jnp.abs(x)
    t = 1.0 / (1.0 + p * ax)
    poly = ((((a5 * t + a4) * t + a3) * t + a2) * t + a1) * t
    y = 1.0 - poly * jnp.exp(-ax * ax)          # exp -> EUP slot (free vs. VPU)
    return jnp.where(x >= 0.0, y, -y)


def _gelu(x):
    # exact (erf-form) GELU, matching nn.GELU() default
    return 0.5 * x * (1.0 + _erf(x * 0.7071067811865476))


def _mlp_kernel(x_ref, w1_ref, b1_ref, w2_ref, b2_ref, out_ref):
    # x_ref: (Cin, TN) -- channels in sublanes, spatial positions in lanes (lane-dense).
    x = x_ref[...]
    # fc1 (1x1 conv): (Chid, Cin) @ (Cin, TN) + bias, then exact-erf GELU.
    h = jnp.dot(w1_ref[...], x, preferred_element_type=jnp.float32) + b1_ref[...]
    h = _gelu(h)
    # Dropout(p=0.0) -> identity.
    # fc2 (1x1 conv): (Cout, Chid) @ (Chid, TN) + bias.
    y = jnp.dot(w2_ref[...], h, preferred_element_type=jnp.float32) + b2_ref[...]
    out_ref[...] = y.astype(out_ref.dtype)


def _choose_spatial_tile(n_pad, cin, chid, cout, tile_budget_bytes):
    # Block last dim must be divisible by 128 or equal the full extent.
    if n_pad % 128 != 0:
        return n_pad
    # f32 bytes per lane-column held live: double-buffered input + output tiles, plus
    # ~3x the hidden activation (h, GELU temps) resident in VMEM/vregs during compute.
    bytes_per_col = 4 * (2 * cin + 2 * cout + 3 * max(chid, 1))
    max_tile = max(128, (tile_budget_bytes // bytes_per_col) // 128 * 128)
    tn = 128
    while tn * 2 <= max_tile and n_pad % (tn * 2) == 0:
        tn *= 2
    return tn


def mlp_forward(x_nchw, params, *, tile_budget_bytes=24 * 1024 * 1024):
    B, Cin, H, W = x_nchw.shape
    N = H * W
    w1 = params["w1"].astype(jnp.float32)        # (Chid, Cin)
    w2 = params["w2"].astype(jnp.float32)        # (Cout, Chid)
    Chid = w1.shape[0]
    Cout = w2.shape[0]
    assert w1.shape == (Chid, Cin) and w2.shape == (Cout, Chid)

    b1 = params["b1"].reshape(Chid, 1).astype(jnp.float32)
    b2 = params["b2"].reshape(Cout, 1).astype(jnp.float32)

    # NCHW flattened over (H, W) is already the channels-in-sublanes /
    # spatial-in-lanes layout -- no transpose needed in either direction.
    x_flat = x_nchw.reshape(B, Cin, N).astype(jnp.float32)

    # Pad the lane (spatial) axis to a multiple of 128 so every store is an
    # unmasked lane-dense vst; padded columns are sliced off below.
    N_pad = ((N + 127) // 128) * 128
    if N_pad != N:
        x_flat = jnp.pad(x_flat, ((0, 0), (0, 0), (0, N_pad - N)))

    TN = _choose_spatial_tile(N_pad, Cin, Chid, Cout, tile_budget_bytes)
    grid = (B, N_pad // TN)

    out_flat = pl.pallas_call(
        _mlp_kernel,
        out_shape=jax.ShapeDtypeStruct((B, Cout, N_pad), jnp.float32),
        grid_spec=pltpu.PrefetchScalarGridSpec(
            num_scalar_prefetch=0,
            grid=grid,
            in_specs=[
                pl.BlockSpec((None, Cin, TN), lambda b, n: (b, 0, n)),   # x tile
                pl.BlockSpec((Chid, Cin), lambda b, n: (0, 0)),          # fc1 weight
                pl.BlockSpec((Chid, 1), lambda b, n: (0, 0)),            # fc1 bias
                pl.BlockSpec((Cout, Chid), lambda b, n: (0, 0)),         # fc2 weight
                pl.BlockSpec((Cout, 1), lambda b, n: (0, 0)),            # fc2 bias
            ],
            out_specs=pl.BlockSpec((None, Cout, TN), lambda b, n: (b, 0, n)),
        ),
        compiler_params=pltpu.CompilerParams(
            dimension_semantics=("parallel", "parallel"),
            vmem_limit_bytes=48 * 1024 * 1024,
        ),
    )(x_flat, w1, b1, w2, b2)

    if N_pad != N:
        out_flat = out_flat[:, :, :N]
    return out_flat.reshape(B, Cout, H, W)


def init_params(Cin, Chid, Cout, key):
    # Mimic PyTorch Conv2d default init scale (uniform in +/- 1/sqrt(fan_in)).
    k1, k2, k3, k4 = jax.random.split(key, 4)
    bound1 = 1.0 / (Cin ** 0.5)
    bound2 = 1.0 / (Chid ** 0.5)
    return {
        "w1": jax.random.uniform(k1, (Chid, Cin), jnp.float32, -bound1, bound1),
        "b1": jax.random.uniform(k2, (Chid,), jnp.float32, -bound1, bound1),
        "w2": jax.random.uniform(k3, (Cout, Chid), jnp.float32, -bound2, bound2),
        "b2": jax.random.uniform(k4, (Cout,), jnp.float32, -bound2, bound2),
    }


def mlp_reference(x, params):
    # Pure-JAX reference of the PyTorch module (exact erf GELU).
    w1, b1, w2, b2 = params["w1"], params["b1"], params["w2"], params["b2"]
    hp = jax.lax.Precision.HIGHEST
    h = jnp.einsum("oc,bchw->bohw", w1, x, precision=hp) + b1[None, :, None, None]
    h = 0.5 * h * (1.0 + jax.scipy.special.erf(h * 0.7071067811865476))
    y = jnp.einsum("oc,bchw->bohw", w2, h, precision=hp) + b2[None, :, None, None]
    return y


if __name__ == "__main__":
    B, Cin, H, W = 2, 4, 16, 16
    Chid, Cout = 32, 4          # hidden_features=32, out_features = in_features

    key = jax.random.PRNGKey(0)
    k_x, k_p = jax.random.split(key)
    x = jax.random.normal(k_x, (B, Cin, H, W), dtype=jnp.float32)
    params = init_params(Cin, Chid, Cout, k_p)

    y = jax.block_until_ready(mlp_forward(x, params))

    assert y.shape == (B, Cout, H, W)
    assert bool(jnp.all(jnp.isfinite(y)))

    y_ref = mlp_reference(x, params)
    max_err = float(jnp.max(jnp.abs(y - y_ref)))
    assert bool(jnp.allclose(y, y_ref, atol=1e-3, rtol=1e-3)), f"max_err={max_err}"

    print("KERNEL_OK")
</pallas_src>

<mosaic_0001>
module attributes {stable_mosaic.version = 11 : i64} {
  func.func @_mlp_kernel(%arg0: i32, %arg1: i32, %arg2: memref<1x4x256xf32, #tpu.memory_space<vmem>>, %arg3: memref<32x4xf32, #tpu.memory_space<vmem>>, %arg4: memref<32x1xf32, #tpu.memory_space<vmem>>, %arg5: memref<4x32xf32, #tpu.memory_space<vmem>>, %arg6: memref<4x1xf32, #tpu.memory_space<vmem>>, %arg7: memref<1x4x256xf32, #tpu.memory_space<vmem>>) attributes {dimension_semantics = [#tpu.dimension_semantics<parallel>, #tpu.dimension_semantics<parallel>], iteration_bounds = array<i64: 2, 1>, scalar_prefetch = 0 : i64, scratch_operands = 0 : i64, tpu.core_type = #tpu.core_type<tc>, window_params = [{transform_indices = @transform_0, window_bounds = array<i64: 1, 4, 256>}, {pipeline_mode = #tpu.pipeline_mode<synchronous>, transform_indices = @transform_1, window_bounds = array<i64: 32, 4>}, {pipeline_mode = #tpu.pipeline_mode<synchronous>, transform_indices = @transform_2, window_bounds = array<i64: 32, 1>}, {pipeline_mode = #tpu.pipeline_mode<synchronous>, transform_indices = @transform_3, window_bounds = array<i64: 4, 32>}, {pipeline_mode = #tpu.pipeline_mode<synchronous>, transform_indices = @transform_4, window_bounds = array<i64: 4, 1>}, {transform_indices = @transform_5, window_bounds = array<i64: 1, 4, 256>}]} {
    %c0 = arith.constant 0 : index
    %c0_0 = arith.constant 0 : index
    %c0_1 = arith.constant 0 : index
    %0 = vector.load %arg2[%c0, %c0_0, %c0_1] : memref<1x4x256xf32, #tpu.memory_space<vmem>>, vector<1x4x256xf32>
    %1 = vector.shape_cast %0 : vector<1x4x256xf32> to vector<4x256xf32>
    %c0_2 = arith.constant 0 : index
    %c0_3 = arith.constant 0 : index
    %2 = vector.load %arg3[%c0_2, %c0_3] : memref<32x4xf32, #tpu.memory_space<vmem>>, vector<32x4xf32>
    %cst = arith.constant dense<0.000000e+00> : vector<32x256xf32>
    %3 = tpu.matmul %2, %1, %cst {dimension_numbers = #tpu.dot_dimension_numbers<[1], [0], [0], [1], [0, 0, 1, 1], [], []>} : vector<32x4xf32>, vector<4x256xf32>, vector<32x256xf32> -> vector<32x256xf32>
    %c0_4 = arith.constant 0 : index
    %c0_5 = arith.constant 0 : index
    %4 = vector.load %arg4[%c0_4, %c0_5] : memref<32x1xf32, #tpu.memory_space<vmem>>, vector<32x1xf32>
    %5 = vector.broadcast %4 : vector<32x1xf32> to vector<32x256xf32>
    %6 = arith.addf %3, %5 : vector<32x256xf32>
    %cst_6 = arith.constant 5.000000e-01 : f32
    %7 = vector.broadcast %cst_6 : f32 to vector<32x256xf32>
    %8 = arith.mulf %7, %6 : vector<32x256xf32>
    %cst_7 = arith.constant 0.707106769 : f32
    %9 = vector.broadcast %cst_7 : f32 to vector<32x256xf32>
    %10 = arith.mulf %6, %9 : vector<32x256xf32>
    %11 = math.absf %10 : vector<32x256xf32>
    %cst_8 = arith.constant 0.327591091 : f32
    %12 = vector.broadcast %cst_8 : f32 to vector<32x256xf32>
    %13 = arith.mulf %12, %11 : vector<32x256xf32>
    %cst_9 = arith.constant 1.000000e+00 : f32
    %14 = vector.broadcast %cst_9 : f32 to vector<32x256xf32>
    %15 = arith.addf %14, %13 : vector<32x256xf32>
    %cst_10 = arith.constant 1.000000e+00 : f32
    %16 = vector.broadcast %cst_10 : f32 to vector<32x256xf32>
    %17 = arith.divf %16, %15 : vector<32x256xf32>
    %cst_11 = arith.constant 1.06140542 : f32
    %18 = vector.broadcast %cst_11 : f32 to vector<32x256xf32>
    %19 = arith.mulf %18, %17 : vector<32x256xf32>
    %cst_12 = arith.constant -1.45315206 : f32
    %20 = vector.broadcast %cst_12 : f32 to vector<32x256xf32>
    %21 = arith.addf %19, %20 : vector<32x256xf32>
    %22 = arith.mulf %21, %17 : vector<32x256xf32>
    %cst_13 = arith.constant 1.42141378 : f32
    %23 = vector.broadcast %cst_13 : f32 to vector<32x256xf32>
    %24 = arith.addf %22, %23 : vector<32x256xf32>
    %25 = arith.mulf %24, %17 : vector<32x256xf32>
    %cst_14 = arith.constant -0.284496725 : f32
    %26 = vector.broadcast %cst_14 : f32 to vector<32x256xf32>
    %27 = arith.addf %25, %26 : vector<32x256xf32>
    %28 = arith.mulf %27, %17 : vector<32x256xf32>
    %cst_15 = arith.constant 0.254829586 : f32
    %29 = vector.broadcast %cst_15 : f32 to vector<32x256xf32>
    %30 = arith.addf %28, %29 : vector<32x256xf32>
    %31 = arith.mulf %30, %17 : vector<32x256xf32>
    %cst_16 = arith.constant 0.000000e+00 : f32
    %32 = vector.broadcast %cst_16 : f32 to vector<32x256xf32>
    %33 = arith.subf %32, %11 : vector<32x256xf32>
    %34 = arith.mulf %33, %11 : vector<32x256xf32>
    %35 = math.exp %34 : vector<32x256xf32>
    %36 = arith.mulf %31, %35 : vector<32x256xf32>
    %cst_17 = arith.constant 1.000000e+00 : f32
    %37 = vector.broadcast %cst_17 : f32 to vector<32x256xf32>
    %38 = arith.subf %37, %36 : vector<32x256xf32>
    %cst_18 = arith.constant 0.000000e+00 : f32
    %39 = vector.broadcast %cst_18 : f32 to vector<32x256xf32>
    %40 = arith.cmpf oge, %10, %39 : vector<32x256xf32>
    %cst_19 = arith.constant 0.000000e+00 : f32
    %41 = vector.broadcast %cst_19 : f32 to vector<32x256xf32>
    %42 = arith.subf %41, %38 : vector<32x256xf32>
    %43 = arith.select %40, %38, %42 : vector<32x256xi1>, vector<32x256xf32>
    %cst_20 = arith.constant 1.000000e+00 : f32
    %44 = vector.broadcast %cst_20 : f32 to vector<32x256xf32>
    %45 = arith.addf %44, %43 : vector<32x256xf32>
    %46 = arith.mulf %8, %45 : vector<32x256xf32>
    %c0_21 = arith.constant 0 : index
    %c0_22 = arith.constant 0 : index
    %47 = vector.load %arg5[%c0_21, %c0_22] : memref<4x32xf32, #tpu.memory_space<vmem>>, vector<4x32xf32>
    %cst_23 = arith.constant dense<0.000000e+00> : vector<4x256xf32>
    %48 = tpu.matmul %47, %46, %cst_23 {dimension_numbers = #tpu.dot_dimension_numbers<[1], [0], [0], [1], [0, 0, 1, 1], [], []>} : vector<4x32xf32>, vector<32x256xf32>, vector<4x256xf32> -> vector<4x256xf32>
    %c0_24 = arith.constant 0 : index
    %c0_25 = arith.constant 0 : index
    %49 = vector.load %arg6[%c0_24, %c0_25] : memref<4x1xf32, #tpu.memory_space<vmem>>, vector<4x1xf32>
    %50 = vector.broadcast %49 : vector<4x1xf32> to vector<4x256xf32>
    %51 = arith.addf %48, %50 : vector<4x256xf32>
    %c0_26 = arith.constant 0 : index
    %c0_27 = arith.constant 0 : index
    %c0_28 = arith.constant 0 : index
    %52 = vector.load %arg7[%c0_26, %c0_27, %c0_28] : memref<1x4x256xf32, #tpu.memory_space<vmem>>, vector<1x4x256xf32>
    %53 = vector.shape_cast %52 : vector<1x4x256xf32> to vector<4x256xf32>
    %54 = vector.shape_cast %51 : vector<4x256xf32> to vector<1x4x256xf32>
    tpu.vector_store %arg7[%c0_26, %c0_27, %c0_28], %54 {strides = array<i32>} : memref<1x4x256xf32, #tpu.memory_space<vmem>>, vector<1x4x256xf32>,
    return
  }
  func.func @transform_0(%arg0: i32, %arg1: i32) -> (i32, i32, i32) {
    %c0_i32 = arith.constant 0 : i32
    %c0_i32_0 = arith.constant 0 : i32
    return %arg0, %c0_i32, %arg1 : i32, i32, i32
  }
  func.func @transform_1(%arg0: i32, %arg1: i32) -> (i32, i32) {
    %c0_i32 = arith.constant 0 : i32
    %c0_i32_0 = arith.constant 0 : i32
    %c0_i32_1 = arith.constant 0 : i32
    return %c0_i32, %c0_i32_0 : i32, i32
  }
  func.func @transform_2(%arg0: i32, %arg1: i32) -> (i32, i32) {
    %c0_i32 = arith.constant 0 : i32
    %c0_i32_0 = arith.constant 0 : i32
    %c0_i32_1 = arith.constant 0 : i32
    return %c0_i32, %c0_i32_0 : i32, i32
  }
  func.func @transform_3(%arg0: i32, %arg1: i32) -> (i32, i32) {
    %c0_i32 = arith.constant 0 : i32
    %c0_i32_0 = arith.constant 0 : i32
    %c0_i32_1 = arith.constant 0 : i32
    return %c0_i32, %c0_i32_0 : i32, i32
  }
  func.func @transform_4(%arg0: i32, %arg1: i32) -> (i32, i32) {
    %c0_i32 = arith.constant 0 : i32
    %c0_i32_0 = arith.constant 0 : i32
    %c0_i32_1 = arith.constant 0 : i32
    return %c0_i32, %c0_i32_0 : i32, i32
  }
  func.func @transform_5(%arg0: i32, %arg1: i32) -> (i32, i32, i32) {
    %c0_i32 = arith.constant 0 : i32
    %c0_i32_0 = arith.constant 0 : i32
    return %arg0, %c0_i32, %arg1 : i32, i32, i32
  }
}

</mosaic_0001>

<bundles_post_ra>
// kernel: tpu_custom_call.1
= control target key start
LH: loop header
LB: loop body
LE: loop exit
PB: predicated region body
PF: predicated region fallthrough
CT: control target
= control target key end

     0   :  { %10 = vsyncpa [#allocation3], 0  ;;  %s1289_s0 = inlined_call_operand.vmem [shape: f32[2,4,256], index: 0, kind: input, shape index: {}]   ;;  %s1290_s1 = inlined_call_operand.vmem [shape: f32[32,4], index: 1, kind: input, shape index: {}]   ;;  %s1291_s2 = inlined_call_operand.vmem [shape: f32[32,1], index: 2, kind: input, shape index: {}]   ;;  %s1292_s3 = inlined_call_operand.vmem [shape: f32[4,32], index: 3, kind: input, shape index: {}]   ;;  %s1293_s4 = inlined_call_operand.vmem [shape: f32[4,1], index: 4, kind: input, shape index: {}]   ;;  %s1294_s5 = inlined_call_operand.hbm [shape: f32[2,4,256], index: 5, kind: output, shape index: {}]  }
   0x1   :  { %12 = vsyncpa [#allocation3 + $0x1], 0  ;;  %s1023_s18 = smov 0   ;;  %s1025_s19 = smov 0  }
   0x2   :  { %s1027_s20 = smov 0   ;;  %s1029_s21 = smov 0  }
   0x3   :  { %s1031_s22 = smov 0   ;;  %s1033_s23 = smov 0  }
   0x4 LB: > { %s788_s24 = sadd.s32 4294967295, %s988_s23   ;;  %s789_s25 = sadd.s32 4294967294, %s988_s23   ;;  %s988_s23 = sphi %s1033_s23, %s18_s23   ;;  %s984_s22 = sphi %s1031_s22, %s1301_s22   ;;  %s980_s21 = sphi %s1029_s21, %s1300_s21   ;;  %s976_s20 = sphi %s1027_s20, %s1299_s20   ;;  %s972_s19 = sphi %s1025_s19, %s1298_s19   ;;  %s968_s18 = sphi %s1023_s18, %s1297_s18  }
   0x5   : > { %s30_s26 = sadd.s32 1, %s984_s22  ;;  %s151_s27 = sadd.s32 1, %s976_s20 }
   0x6   : > { %p32_p0 = scmp.ge.s32.totalorder %s30_s26, 2  ;;  %p161_p1 = scmp.ne.s32.totalorder %s976_s20, %s972_s19 }
   0x7   : > { %p162_p2 = scmp.eq.s32.totalorder %s788_s24, 1  ;;  %p167_p3 = scmp.ne.s32.totalorder %s972_s19, %s968_s18 }
   0x8   : > { %s1303_s26 = smov (%p32_p0, %s30_s26), 0  ;;  %p168_p5 = scmp.eq.s32.totalorder %s789_s25, 1 }
   0x9   : > { %p1063_p4 = por %p162_p2, %p161_p1  ;;  %s146_s29 = ssub.s32 %s984_s22, %s1303_s26 }
   0xa   : > { %p792_p6 = scmp.ge.s32.totalorder %s988_s23, 1  ;;  %p149_p7 = scmp.eq.s32.totalorder %s146_s29, 0 }
   0xb   : > { %p1070_p8 = por %p168_p5, %p167_p3  ;;  %p211_p9 = scmp.lt.s32.totalorder %s988_s23, 3 }
   0xc   : > { %s1076_s6 = scalar_select %p149_p7, %s976_s20, %s151_s27  }
   0xd   : > { %p212_p10 = pnand %p792_p6, %p211_p9 }
   0xe   : > { %p244_p11 = scmp.lt.s32.totalorder (!%p212_p10), %s980_s21, 1  ;;  %v990_v0 = vmov (!%p212_p10), 0.0   ;;  %v259_v1 = vld [vmem:[%s1291_s2] sm:$0xff] (!%p212_p10)  ;;  %v991_v2 = vmov (!%p212_p10), 0   ;;  %v261_v3 = vld [vmem:[%s1291_s2 + $0x10] sm:$0xff] (!%p212_p10)  ;;  %v260_v4 = vld [vmem:[%s1291_s2 + $0x8] sm:$0xff] (!%p212_p10) }
   0xf   : > { %215 = sbr.rel (%p212_p10) target bundleno = 544 (0x220), region = 40  ;;  %367 = vmatprep.mubr.f32.mxu0 (!%p212_p10), %v990_v0  ;;  %683 = vmatprep.mubr.f32.mxu1 (!%p212_p10), %v990_v0  ;;  %v262_v5 = vld [vmem:[%s1291_s2 + $0x18] sm:$0xff] (!%p212_p10)  ;;  %vm298_vm0 = vcmask (!%p212_p10), 1043456   ;;  %v255_v8 = vld [vmem:[%s1290_s1] sm:$0xff] (!%p212_p10)  ;;  %vm285_vm1 = vcmask (!%p212_p10), 31744   ;;  %v256_v10 = vld [vmem:[%s1290_s1 + $0x8] sm:$0xff] (!%p212_p10) }
  0x10   : > { %875 = vset.pattern.permute.xlu0 (!%p212_p10), %v991_v2  ;;  %876 = vset.pattern.permute.xlu1 (!%p212_p10), %v991_v2  ;;  %v609_v9 = vld [vmem:[%s1293_s4] sm:$0xf] (!%p212_p10)  ;;  %v257_v11 = vld [vmem:[%s1290_s1 + $0x10] sm:$0xff] (!%p212_p10)  ;;  %v258_v12 = vld [vmem:[%s1290_s1 + $0x18] sm:$0xff] (!%p212_p10)  ;;  %vm615_vm10 = vcmask (!%p212_p10), 261120   ;;  %s240_s17 = sand.u32 (!%p212_p10), 1, %s972_s19  }
  0x11   : > { %265 = vperm.xlu0 (!%p212_p10), %875, %v259_v1   ;;  %275 = vperm.xlu1 (!%p212_p10), %876, %v261_v3   ;;  %s793_s24 = sshll.u32 (!%p212_p10), %s240_s17, 3  ;;  %s696_s10 = scalar_lea.sflag (!%p212_p10), [#allocation3], %s240_s17 }
  0x12   : > { %s242_s27 = scalar_lea.vmem (!%p212_p10), [#allocation2], %s793_s24 }
  0x13   : > { %s712_s29 = sshll.u32 (!%p212_p10), %s242_s27, 4  ;;  %s1244_s29 = int_to_ptr.vmem [resolvable:$true] %s712_s29 }
  0x14   : > { %s910_s11 = scalar_lea.vmem (!%p212_p10), %s1244_s29, 128 }
  0x15   : > { %270 = vperm.xlu0 (!%p212_p10), %875, %v260_v4   ;;  %280 = vperm.xlu1 (!%p212_p10), %876, %v262_v5   ;;  %p911_p12 = scmp.ne.s32.totalorder (!%p212_p10), %s1244_s29, %s910_s11 }
  0x16   : > { %s245_s9 = scalar_select %p244_p11, %s980_s21, 1 }
  0x17   : > { %p912_p13 = pnand %p911_p12, %p1063_p4 }
  0x18   : > { %s808_s12 = sshll.u32 %s245_s9, 3 }
  0x19   : > { %s251_s25 = scalar_lea.vmem %s1289_s0, %s808_s12  ;;  %612 = vperm.xlu0 %875, %v609_v9   ;;  %p913_p0 = pneg %p912_p13 }
  0x1a   : > { %v254_v6 = vld [vmem:[%s251_s25] sm:$0xff]  ;;  %s809_s25 = sshll.u32 %s980_s21, 7  ;;  %s992_s21 = smov [#allocation2]  }
  0x1b   : > { %v284_v7 = vcombine.high %v254_v6, %v254_v6  ;;  %s1242_s9 = scalar_lea.hbm %s1294_s5, %s809_s25  ;;  %s914_s12 = sshll.u32 %s992_s21, 4  ;;  %s915_s12 = int_to_ptr.vmem [resolvable:$false] %s914_s12 }
  0x1c   : > { %s916_s13 = scalar_lea.vmem %s915_s12, 256  ;;  %p917_p1 = scmp.lt.s32.totalorder %s1244_s29, %s915_s12 }
  0x1d   : > { %796 = vmatprep.subr.msk.mxu0 %vm298_vm0, %v284_v7  ;;  %p918_p2 = scmp.lt.s32.totalorder %s916_s13, %s910_s11 }
  0x1e   : > { %797 = vmatpush1.msk.msra.mxu0 %vm298_vm0, %v254_v6 }
  0x1f   : > { %798 = vmatmul.mubr.msk.f32.vlgmr.msra.gmra.mrb[0].mxu0 %vm285_vm1, %v255_v8  ;;  %p919_p3 = por %p918_p2, %p917_p1 }
  0x20   : > { %373 = vmatprep.mubr.f32.mxu0 %v990_v0 }
  0x21   : > { %p920_p5 = pnand %p919_p3, %p913_p0 }
  0x23   : > { %799 = vmatmul.mubr.msk.f32.gmra.mrb[2].mxu0 %vm285_vm1, %v256_v10 }
  0x24   : > { %379 = vmatprep.mubr.f32.mxu0 %v990_v0 }
  0x27   : > { %800 = vmatmul.mubr.msk.f32.gmra.mrb[4].mxu0 %vm285_vm1, %v257_v11 }
  0x28   : > { %385 = vmatprep.mubr.f32.mxu0 %v990_v0 }
  0x2b   : > { %801 = vmatmul.mubr.msk.f32.gmra.mrb[6].mxu0 %vm285_vm1, %v258_v12 }
  0x90   : > { %v266_v13 = vpop.permute.xlu0 %265  ;;  %v276_v35 = vpop.permute.xlu1 %275 }
  0x94   : > { %v271_v19 = vpop.permute.xlu0 %270  ;;  %v281_v49 = vpop.permute.xlu1 %280 }
  0xf2   : > { %v369_v14 = vpop.f32.mrb[0].mxu0 }
  0xf3   : > { %v370_v15 = vadd.f32 %v369_v14, %v266_v13  ;;  %v371_v16 = vpop.f32.mrb[1].mxu0 }
  0xf4   : > { %v372_v17 = vadd.f32 %v371_v16, %v266_v13 }
  0xf5   : > { %v1110_v18 = vmul.f32 0.70710677, %v370_v15  ;;  %v1135_v53 = vmul.f32 0.5, %v370_v15 }
  0xf6   : > { %v1112_v20 = vmul.f32 0.70710677, %v372_v17  ;;  %v375_v21 = vpop.f32.mrb[2].mxu0  ;;  %v1140_v58 = vmul.f32 0.5, %v372_v17 }
  0xf7   : > { %v408_v22 = vand.u32 2147483647, %v1110_v18  ;;  %v376_v23 = vadd.f32 %v375_v21, %v271_v19  ;;  %v377_v24 = vpop.f32.mrb[3].mxu0  ;;  %vm568_vm3 = vcmp.ge.f32.partialorder %v1110_v18, 0.0 }
  0xf8   : > { %v409_v25 = vand.u32 2147483647, %v1112_v20  ;;  %v378_v26 = vadd.f32 %v377_v24, %v271_v19  ;;  %vm569_vm2 = vcmp.ge.f32.partialorder %v1112_v20, 0.0 }
  0xf9   : > { %v416_v27 = vmul.f32 0.3275911, %v408_v22  ;;  %v1116_v28 = vmul.f32 0.70710677, %v376_v23  ;;  %v520_v46 = vsub.f32 0.0, %v408_v22  ;;  %v1145_v62 = vmul.f32 0.5, %v376_v23 }
  0xfa   : > { %v417_v29 = vmul.f32 0.3275911, %v409_v25  ;;  %v1118_v30 = vmul.f32 0.70710677, %v378_v26  ;;  %v381_v33 = vpop.f32.mrb[4].mxu0  ;;  %v521_v48 = vsub.f32 0.0, %v409_v25 }
  0xfb   : > { %v424_v31 = vadd.f32 1.0, %v416_v27  ;;  %v410_v32 = vand.u32 2147483647, %v1116_v28  ;;  %v383_v37 = vpop.f32.mrb[5].mxu0  ;;  %v1122_v42 = vadd.f32 %v381_v33, %v276_v35  ;;  %v528_v57 = vmul.f32 %v520_v46, %v408_v22 }
  0xfc   : > { %v425_v34 = vadd.f32 1.0, %v417_v29  ;;  %v411_v36 = vand.u32 2147483647, %v1118_v30  ;;  %v1124_v45 = vadd.f32 %v383_v37, %v276_v35  ;;  %v529_v61 = vmul.f32 %v521_v48, %v409_v25 }
  0xfd   : > { %v418_v38 = vmul.f32 0.3275911, %v410_v32  ;;  %v1127_v47 = vmul.f32 0.70710677, %v1122_v42  ;;  %v522_v54 = vsub.f32 0.0, %v410_v32  ;;  %v1150_v1 = vmul.f32 0.5, %v378_v26 }
  0xfe   : > { %878 = vrcp.f32 %v425_v34  ;;  %v419_v39 = vmul.f32 0.3275911, %v411_v36  ;;  %v387_v40 = vpop.f32.mrb[6].mxu0  ;;  %v1130_v50 = vmul.f32 0.70710677, %v1124_v45  ;;  %v523_v2 = vsub.f32 0.0, %v411_v36 }
  0xff   : > { %880 = vrcp.f32 %v424_v31  ;;  %v426_v41 = vadd.f32 1.0, %v418_v38  ;;  %v389_v43 = vpop.f32.mrb[7].mxu0  ;;  %v412_v51 = vand.u32 2147483647, %v1127_v47  ;;  %v1133_v52 = vadd.f32 %v387_v40, %v281_v49 }
 0x100   : > { %v427_v44 = vadd.f32 1.0, %v419_v39  ;;  %v413_v55 = vand.u32 2147483647, %v1130_v50  ;;  %v1138_v56 = vadd.f32 %v389_v43, %v281_v49  ;;  %v530_v6 = vmul.f32 %v522_v54, %v410_v32 }
 0x101   : > { %882 = vrcp.f32 %v426_v41  ;;  %v420_v59 = vmul.f32 0.3275911, %v412_v51  ;;  %v1143_v60 = vmul.f32 0.70710677, %v1133_v52  ;;  %v524_v7 = vsub.f32 0.0, %v412_v51 }
 0x102   : > { %884 = vrcp.f32 %v427_v44  ;;  %v421_v63 = vmul.f32 0.3275911, %v413_v55  ;;  %v1148_v0 = vmul.f32 0.70710677, %v1138_v56  ;;  %v536_v11 = vmul.f32 1.442695, %v528_v57 }
 0x103   : > { %v428_v3 = vadd.f32 1.0, %v420_v59  ;;  %v414_v4 = vand.u32 2147483647, %v1143_v60  ;;  %v525_v12 = vsub.f32 0.0, %v413_v55  ;;  %v538_v14 = vmul.f32 1.442695, %v529_v61 }
 0x104   : > { %v429_v8 = vadd.f32 1.0, %v421_v63  ;;  %v415_v9 = vand.u32 2147483647, %v1148_v0  ;;  %v531_v19 = vmul.f32 %v523_v2, %v411_v36  ;;  %v540_v25 = vmul.f32 1.442695, %v530_v6 }
 0x105   : > { %886 = vrcp.f32 %v428_v3  ;;  %v422_v13 = vmul.f32 0.3275911, %v414_v4  ;;  %v526_v15 = vsub.f32 0.0, %v414_v4  ;;  %v532_v26 = vmul.f32 %v524_v7, %v412_v51 }
 0x106   : > { %888 = vrcp.f32 %v429_v8  ;;  %v423_v16 = vmul.f32 0.3275911, %v415_v9  ;;  %v527_v22 = vsub.f32 0.0, %v415_v9  ;;  %v533_v31 = vmul.f32 %v525_v12, %v413_v55 }
 0x107   : > { %v430_v21 = vadd.f32 1.0, %v422_v13  ;;  %v534_v34 = vmul.f32 %v526_v15, %v414_v4  ;;  %v542_v37 = vmul.f32 1.442695, %v531_v19  ;;  %v544_v41 = vmul.f32 1.442695, %v532_v26 }
 0x108   : > { %v1153_v5 = vpop.eup %878  ;;  %v431_v27 = vadd.f32 1.0, %v423_v16  ;;  %v535_v38 = vmul.f32 %v527_v22, %v415_v9  ;;  %v546_v46 = vmul.f32 1.442695, %v533_v31  ;;  %vm571_vm4 = vcmp.ge.f32.partialorder %v1118_v30, 0.0 }
 0x109   : > { %v1156_v10 = vpop.eup %880  ;;  %v449_v23 = vmul.f32 1.0614054, %v1153_v5  ;;  %890 = vrcp.f32 %v430_v21  ;;  %v548_v51 = vmul.f32 1.442695, %v534_v34  ;;  %vm570_vm5 = vcmp.ge.f32.partialorder %v1116_v28, 0.0 }
 0x10a   : > { %v448_v29 = vmul.f32 1.0614054, %v1156_v10  ;;  %892 = vrcp.f32 %v431_v27  ;;  %v550_v59 = vmul.f32 1.442695, %v535_v38  ;;  %vm572_vm6 = vcmp.ge.f32.partialorder %v1127_v47, 0.0 }
 0x10b   : > { %v1158_v17 = vpop.eup %882  ;;  %v457_v33 = vadd.f32 -1.4531521, %v449_v23  ;;  %894 = vpow2.f32 %v536_v11  ;;  %vm573_vm7 = vcmp.ge.f32.partialorder %v1130_v50, 0.0  ;;  %vm574_vm8 = vcmp.ge.f32.partialorder %v1143_v60, 0.0 }
 0x10c   : > { %v1161_v24 = vpop.eup %884  ;;  %v450_v35 = vmul.f32 1.0614054, %v1158_v17  ;;  %v456_v36 = vadd.f32 -1.4531521, %v448_v29  ;;  %896 = vpow2.f32 %v538_v14  ;;  %vm575_vm9 = vcmp.ge.f32.partialorder %v1148_v0, 0.0 }
 0x10d   : > { %v451_v32 = vmul.f32 1.0614054, %v1161_v24  ;;  %v465_v40 = vmul.f32 %v1153_v5, %v457_v33  ;;  %898 = vpow2.f32 %v540_v25  ;;  %v396_v47 = vmul.f32 0.5, %v1122_v42  ;;  %v608_v42 = vld [vmem:[%s1292_s3] sm:$0xf] }
 0x10e   : > { %v458_v43 = vadd.f32 -1.4531521, %v450_v35  ;;  %v464_v44 = vmul.f32 %v1156_v10, %v456_v36  ;;  %900 = vpow2.f32 %v542_v37 }
 0x10f   : > { %v459_v39 = vadd.f32 -1.4531521, %v451_v32  ;;  %v473_v49 = vadd.f32 1.4214138, %v465_v40  ;;  %v1170_v57 = vpop.eup %886  ;;  %902 = vpow2.f32 %v544_v41 }
 0x110   : > { %v466_v54 = vmul.f32 %v1158_v17, %v458_v43  ;;  %v472_v55 = vadd.f32 1.4214138, %v464_v44  ;;  %v1173_v2 = vpop.eup %888  ;;  %v452_v3 = vmul.f32 1.0614054, %v1170_v57  ;;  %904 = vpow2.f32 %v546_v46 }
 0x111   : > { %v467_v48 = vmul.f32 %v1161_v24, %v459_v39  ;;  %v481_v63 = vmul.f32 %v1153_v5, %v473_v49  ;;  %v453_v7 = vmul.f32 1.0614054, %v1173_v2  ;;  %906 = vpow2.f32 %v548_v51 }
 0x112   : > { %v474_v4 = vadd.f32 1.4214138, %v466_v54  ;;  %v480_v6 = vmul.f32 %v1156_v10, %v472_v55  ;;  %v460_v11 = vadd.f32 -1.4531521, %v452_v3  ;;  %908 = vpow2.f32 %v550_v59 }
 0x113   : > { %v475_v61 = vadd.f32 1.4214138, %v467_v48  ;;  %v489_v9 = vadd.f32 -0.28449672, %v481_v63  ;;  %v1180_v14 = vpop.eup %890  ;;  %v461_v15 = vadd.f32 -1.4531521, %v453_v7 }
 0x114   : > { %v482_v12 = vmul.f32 %v1158_v17, %v474_v4  ;;  %v488_v13 = vadd.f32 -0.28449672, %v480_v6  ;;  %v1183_v21 = vpop.eup %892  ;;  %v468_v22 = vmul.f32 %v1170_v57, %v460_v11  ;;  %v454_v23 = vmul.f32 1.0614054, %v1180_v14 }
 0x115   : > { %v483_v8 = vmul.f32 %v1161_v24, %v475_v61  ;;  %v497_v19 = vmul.f32 %v1153_v5, %v489_v9  ;;  %v469_v27 = vmul.f32 %v1173_v2, %v461_v15  ;;  %v455_v29 = vmul.f32 1.0614054, %v1183_v21  ;;  %v895_v33 = vpop.eup %894 }
 0x116   : > { %v490_v25 = vadd.f32 -0.28449672, %v482_v12  ;;  %v496_v26 = vmul.f32 %v1156_v10, %v488_v13  ;;  %v476_v34 = vadd.f32 1.4214138, %v468_v22  ;;  %v462_v35 = vadd.f32 -1.4531521, %v454_v23  ;;  %v897_v38 = vpop.eup %896 }
 0x117   : > { %v491_v16 = vadd.f32 -0.28449672, %v483_v8  ;;  %v505_v32 = vadd.f32 0.2548296, %v497_v19  ;;  %v477_v39 = vadd.f32 1.4214138, %v469_v27  ;;  %v899_v44 = vpop.eup %898 }
 0x118   : > { %v498_v36 = vmul.f32 %v1158_v17, %v490_v25  ;;  %v504_v37 = vadd.f32 0.2548296, %v496_v26  ;;  %v463_v40 = vadd.f32 -1.4531521, %v455_v29  ;;  %v484_v46 = vmul.f32 %v1170_v57, %v476_v34  ;;  %v901_v54 = vpop.eup %900 }
 0x119   : > { %v499_v31 = vmul.f32 %v1161_v24, %v491_v16  ;;  %v513_v43 = vmul.f32 %v1153_v5, %v505_v32  ;;  %v470_v48 = vmul.f32 %v1180_v14, %v462_v35  ;;  %v485_v55 = vmul.f32 %v1173_v2, %v477_v39  ;;  %v903_v63 = vpop.eup %902 }
 0x11a   : > { %v506_v49 = vadd.f32 0.2548296, %v498_v36  ;;  %v512_v51 = vmul.f32 %v1156_v10, %v504_v37  ;;  %v471_v59 = vmul.f32 %v1183_v21, %v463_v40  ;;  %v492_v3 = vadd.f32 -0.28449672, %v484_v46  ;;  %v905_v8 = vpop.eup %904 }
 0x11b   : > { %v507_v41 = vadd.f32 0.2548296, %v499_v31  ;;  %v553_v5 = vmul.f32 %v897_v38, %v513_v43  ;;  %v478_v4 = vadd.f32 1.4214138, %v470_v48  ;;  %v493_v9 = vadd.f32 -0.28449672, %v485_v55  ;;  %v907_v13 = vpop.eup %906 }
 0x11c   : > { %v514_v6 = vmul.f32 %v1158_v17, %v506_v49  ;;  %v552_v7 = vmul.f32 %v895_v33, %v512_v51  ;;  %v479_v11 = vadd.f32 1.4214138, %v471_v59  ;;  %v500_v15 = vmul.f32 %v1170_v57, %v492_v3  ;;  %v909_v22 = vpop.eup %908 }
 0x11d   : > { %v515_v61 = vmul.f32 %v1161_v24, %v507_v41  ;;  %v561_v12 = vsub.f32 1.0, %v553_v5  ;;  %v486_v16 = vmul.f32 %v1180_v14, %v478_v4  ;;  %v501_v23 = vmul.f32 %v1173_v2, %v493_v9 }
 0x11e   : > { %v554_v24 = vmul.f32 %v899_v44, %v514_v6  ;;  %v560_v19 = vsub.f32 1.0, %v552_v7  ;;  %v487_v25 = vmul.f32 %v1183_v21, %v479_v11  ;;  %v508_v27 = vadd.f32 0.2548296, %v500_v15 }
 0x11f   : > { %v555_v10 = vmul.f32 %v901_v54, %v515_v61  ;;  %v577_v17 = vsub.f32 0.0, %v561_v12  ;;  %v494_v29 = vadd.f32 -0.28449672, %v486_v16  ;;  %v509_v33 = vadd.f32 0.2548296, %v501_v23 }
 0x120   : > { %v562_v31 = vsub.f32 1.0, %v554_v24  ;;  %v576_v32 = vsub.f32 0.0, %v560_v19  ;;  %v495_v34 = vadd.f32 -0.28449672, %v487_v25  ;;  %v516_v37 = vmul.f32 %v1170_v57, %v508_v27 }
 0x121   : > { %v563_v26 = vsub.f32 1.0, %v555_v10  ;;  %v585_v36 = vsel %vm569_vm2, %v561_v12, %v577_v17  ;;  %v502_v38 = vmul.f32 %v1180_v14, %v494_v29  ;;  %v517_v41 = vmul.f32 %v1173_v2, %v509_v33 }
 0x122   : > { %v593_v39 = vadd.f32 1.0, %v585_v36  ;;  %v578_v40 = vsub.f32 0.0, %v562_v31  ;;  %v503_v43 = vmul.f32 %v1183_v21, %v495_v34  ;;  %v584_v46 = vsel %vm568_vm3, %v560_v19, %v576_v32 }
 0x123   : > { %v579_v35 = vsub.f32 0.0, %v563_v26  ;;  %v556_v48 = vmul.f32 %v903_v63, %v516_v37  ;;  %v510_v49 = vadd.f32 0.2548296, %v502_v38  ;;  %v557_v57 = vmul.f32 %v905_v8, %v517_v41 }
 0x124   : > { %v601_v51 = vmul.f32 %v593_v39, %v1140_v58  ;;  %v511_v54 = vadd.f32 0.2548296, %v503_v43  ;;  %v586_v55 = vsel %vm570_vm5, %v562_v31, %v578_v40  ;;  %v592_v59 = vadd.f32 1.0, %v584_v46 }
 0x125   : > { %v587_v44 = vsel %vm571_vm4, %v563_v26, %v579_v35  ;;  %v564_v2 = vsub.f32 1.0, %v556_v48  ;;  %v518_v61 = vmul.f32 %v1180_v14, %v510_v49  ;;  %v594_v5 = vadd.f32 1.0, %v586_v55 }
 0x126   : > { %v595_v20 = vadd.f32 1.0, %v587_v44  ;;  %v565_v3 = vsub.f32 1.0, %v557_v57  ;;  %v519_v18 = vmul.f32 %v1183_v21, %v511_v54  ;;  %v600_v63 = vmul.f32 %v592_v59, %v1135_v53 }
 0x127   : > { %v580_v4 = vsub.f32 0.0, %v564_v2  ;;  %v558_v6 = vmul.f32 %v907_v13, %v518_v61  ;;  %v602_v7 = vmul.f32 %v594_v5, %v1145_v62  ;;  %v398_v15 = vmul.f32 0.5, %v1133_v52 }
 0x128   : > { %v603_v30 = vmul.f32 %v595_v20, %v1150_v1  ;;  %v581_v28 = vsub.f32 0.0, %v565_v3  ;;  %v559_v8 = vmul.f32 %v909_v22, %v519_v18  ;;  %v397_v24 = vmul.f32 0.5, %v1124_v45  ;;  %v613_v45 = vpop.permute.xlu0 %612 }
 0x129   : > { %v588_v9 = vsel %vm572_vm6, %v564_v2, %v580_v4  ;;  %v566_v14 = vsub.f32 1.0, %v558_v6  ;;  %v812_v1 = vpack.c.bf16 %v602_v7, %v600_v63  ;;  %v399_v19 = vmul.f32 0.5, %v1138_v56 }
 0x12a   : > { %v810_v58 = vpack.c.bf16 %v603_v30, %v601_v51  ;;  %v589_v11 = vsel %vm573_vm7, %v565_v3, %v581_v28  ;;  %v567_v10 = vsub.f32 1.0, %v559_v8  ;;  %v596_v53 = vadd.f32 1.0, %v588_v9 }
 0x12b   : > { %v582_v21 = vsub.f32 0.0, %v566_v14  ;;  %v597_v13 = vadd.f32 1.0, %v589_v11 }
 0x12c   : > { %811 = vmatprep.subr.bf16.mxu1 %v810_v58  ;;  %v583_v12 = vsub.f32 0.0, %v567_v10  ;;  %v604_v23 = vmul.f32 %v596_v53, %v396_v47 }
 0x12d   : > { %813 = vmatpush1.bf16.msra.mxu1 %v812_v1  ;;  %v590_v62 = vsel %vm574_vm8, %v566_v14, %v582_v21  ;;  %v605_v60 = vmul.f32 %v597_v13, %v397_v24 }
 0x12e   : > { %v598_v50 = vadd.f32 1.0, %v590_v62  ;;  %v591_v16 = vsel %vm575_vm9, %v567_v10, %v583_v12 }
 0x12f   : > { %v599_v22 = vadd.f32 1.0, %v591_v16 }
 0x130   : > { %v606_v25 = vmul.f32 %v598_v50, %v398_v15 }
 0x131   : > { %v607_v26 = vmul.f32 %v599_v22, %v399_v19 }
 0x132   : > { %v816_v17 = vpack.c.bf16 %v606_v25, %v604_v23 }
 0x133   : > { %v814_v27 = vpack.c.bf16 %v607_v26, %v605_v60 }
 0x135   : > { %815 = vmatprep.subr.bf16.mxu1 %v814_v27 }
 0x136   : > { %817 = vmatpush1.bf16.msra.mxu1 %v816_v17 }
 0x139   : > { %802 = vmatmul.mubr.msk.f32.vlgmr.msra.gmra.mrb[0].mxu1 %vm615_vm10, %v608_v42 }
 0x20c   : > { %v685_v52 = vpop.f32.mrb[0].mxu1 }
 0x20d   : > { %v686_v56 = vadd.f32 %v685_v52, %v613_v45  ;;  %v687_v0 = vpop.f32.mrb[1].mxu1 }
 0x20e   : > { %v688_v29 = vadd.f32 %v687_v0, %v613_v45 }
 0x210   : > { %v692_v31 = vcombine.low %v686_v56, %v688_v29 }
 0x212   : > { %694 = vst [vmem:[%s242_s27] sm:$0xff] %v692_v31 }
 0x213   : > { %923 = shalt.err (!%p920_p5)
}
 0x214   : > { %s924_s14 = scalar_lea.hbm %s1242_s9, 128  ;;  %s928_s17 = scalar_lea.hbm %s1294_s5, 256 }
 0x215   : > { %p925_p6 = scmp.ne.s32.totalorder %s1242_s9, %s924_s14  ;;  %p929_p10 = scmp.lt.u32.totalorder %s1242_s9, %s1294_s5 }
 0x216   : > { %p930_p11 = scmp.lt.u32.totalorder %s928_s17, %s924_s14  ;;  %p932_p13 = scmp.lt.u32.totalorder %s924_s14, %s1242_s9 }
 0x217   : > { %p926_p7 = pnand %p925_p6, %p1063_p4 }
 0x218   : > { %p931_p12 = por %p930_p11, %p929_p10 }
 0x219   : > { %p927_p9 = pneg %p926_p7 }
 0x21a   : > { %p933_p0 = por %p932_p13, %p931_p12 }
 0x21c   : > { %p934_p1 = pnand %p933_p0, %p927_p9 }
 0x21e   : > { %937 = shalt.err (!%p934_p1)
}
 0x21f   : > { %818 = dma.vmem_to_hbm [thread:$0]  (%p1063_p4), %s1244_s29, 128, %s1242_s9, %s696_s10  }
 0x220 PF: > { %p824_p2 = scmp.ge.s32.totalorder %s988_s23, 2  ;;  %s724_s27 = sand.u32 1, %s968_s18  }
 0x221   : > { %s725_s7 = scalar_lea.sflag [#allocation3], %s724_s27 }
 0x222   : > { %p821_p3 = pnand %p824_p2, %p1070_p8 }
 0x224   : > { %963 = dma.done.wait (!%p821_p3), %s725_s7, 128  }
 0x225   : > { %965 = vsyncadd (!%p821_p3), %s725_s7, 4294967168  ;;  %s18_s23 = sadd.s32 1, %s988_s23   ;;  %s1297_s18 = smov %s972_s19 }
 0x226   : > { %p15_p5 = scmp.ge.s32.totalorder %s18_s23, 4   ;;  %s1298_s19 = smov %s976_s20 }
 0x227   : > { %s1299_s20 = smov %s1076_s6  ;;  %s1300_s21 = smov %s984_s22 }
 0x228   : > { %s1301_s22 = smov %s1303_s26  ;;  %17 = sbr.rel (!%p15_p5) target bundleno = 4 (0x4), region = 75 }
 0x22f   :  { %730 = vsyncpa [#allocation3], 1 }
 0x230   :  { %732 = vsyncpa [#allocation3 + $0x1], 1 }

</bundles_post_ra>
